<compile_context>
chip_gen: v6e
topology: v6e:2x2x1
jax: 0.10.0
libtpu: 0.0.40
codegen_flags: <defaults>
</compile_context>

<pallas_src>
import functools
import math

import jax
import jax.numpy as jnp
from jax import lax
from jax.experimental import pallas as pl
from jax.experimental.pallas import tpu as pltpu
import numpy as np


def _temporal_conv_kernel(x_ref, w_ref, b_ref, o_ref, *,
                          kernel_size, dilation, pad, seq_len):
    """Fused Conv1d + folded-BN + GELU over a lane-flattened batch block.

    x_ref: (C_in, bb*L)        lane-flattened input block (lane = b*L + l)
    w_ref: (C_out, K*C_in)     BN-folded conv weight (tap-major columns)
    b_ref: (C_out, 1)          BN-folded bias
    o_ref: (C_out, bb*L)       lane-flattened output block
    """
    _, n_lanes = x_ref.shape
    x = x_ref[...]                                                # (C_in, bb*L)

    # Per-segment (per-batch-element) position of every lane: lane mod L.
    lane = lax.broadcasted_iota(jnp.int32, x.shape, 1)
    if seq_len & (seq_len - 1) == 0:                              # power of two -> cheap AND
        pos = lane & (seq_len - 1)
    else:
        pos = lane % seq_len

    # Build the K conv taps in registers (no scratch round trip).
    # tap_k[:, j] reads x[:, j + k*dilation - pad]; positions falling outside the
    # segment (implicit zero padding OR a neighbouring batch element dragged in by the
    # flattened roll) are masked to zero.
    taps = []
    for k in range(kernel_size):
        shift = k * dilation - pad
        if shift == 0:
            taps.append(x)
        else:
            t = pltpu.roll(x, (-shift) % n_lanes, axis=1)         # t[:, j] = x[:, j+shift]
            src = pos + shift
            taps.append(jnp.where((src >= 0) & (src < seq_len), t, 0.0))
    rhs = taps[0] if kernel_size == 1 else jnp.concatenate(taps, axis=0)   # (K*C_in, bb*L)

    # Single fused matmul for the whole block (conv + folded BN scale), then bias.
    y = jnp.dot(w_ref[...], rhs, preferred_element_type=jnp.float32)       # (C_out, bb*L)
    y = y + b_ref[...]

    # Exact GELU: 0.5*y*(1 + erf(y/sqrt(2))).  erf via Abramowitz-Stegun 7.1.26
    # polynomial (max abs err ~1.5e-7); only exp is needed (routes to the EUP slot).
    z = y * (1.0 / math.sqrt(2.0))
    za = jnp.abs(z)
    t = 1.0 / (1.0 + 0.3275911 * za)
    poly = ((((1.061405429 * t - 1.453152027) * t + 1.421413741) * t
             - 0.284496736) * t + 0.254829592) * t
    erf_abs = 1.0 - poly * jnp.exp(-za * za)
    erf_z = jnp.where(z >= 0.0, erf_abs, -erf_abs)
    y = 0.5 * y * (1.0 + erf_z)

    # Dropout: identity at inference.
    o_ref[...] = y.astype(o_ref.dtype)                            # one unmasked lane-dense store


def _num_tensorcores() -> int:
    """1 TC/chip on v5e/v6e, 2 on v7x (best effort; defaults to 1)."""
    try:
        kind = jax.devices()[0].device_kind.lower()
    except Exception:
        return 1
    return 2 if ("v7" in kind or "tpu7" in kind) else 1


def temporal_conv_block(x, weight, bias, gamma, beta, running_mean, running_var,
                        *, kernel_size=3, dilation=1, eps=1e-5, block_batch=None):
    """x: [B, C_in, L] float32 -> [B, C_out, L_out] float32 (eval-mode forward)."""
    B, c_in, L = x.shape
    c_out = weight.shape[0]
    pad = (kernel_size - 1) * dilation // 2
    out_len = L + 2 * pad - dilation * (kernel_size - 1)          # PyTorch Conv1d length (<= L)

    # Fold eval-mode BatchNorm into the conv weight/bias:
    #   y = ((W*x + b) - mean) * gamma/sqrt(var+eps) + beta = (W*s)*x + ((b-mean)*s + beta)
    scale = (gamma / jnp.sqrt(running_var + eps)).astype(jnp.float32)            # (C_out,)
    w2 = jnp.transpose(weight, (0, 2, 1)).reshape(c_out, kernel_size * c_in)     # tap-major
    w2 = (w2 * scale[:, None]).astype(jnp.float32)
    b2 = ((bias - running_mean) * scale + beta).reshape(c_out, 1).astype(jnp.float32)

    # Lane-flatten the batch: x_flat[c, b*L + l] = x[b, c, l] (one cheap HBM pass).
    x_flat = jnp.transpose(x, (1, 0, 2)).reshape(c_in, B * L)

    # One block per TensorCore: grid=(1,) on single-TC v5e/v6e; grid=(2,) "parallel"
    # on dual-TC v7x.  Fall back to a single full-batch block whenever the split would
    # violate the (8,128) block-shape rule or leave a ragged batch remainder.
    if block_batch is None:
        block_batch = pl.cdiv(B, _num_tensorcores())
    bb = max(1, min(B, int(block_batch)))
    if B % bb != 0 or (bb * L) % 128 != 0:
        bb = B
    grid = (B // bb,)

    kernel = functools.partial(_temporal_conv_kernel, kernel_size=kernel_size,
                               dilation=dilation, pad=pad, seq_len=L)

    out_flat = pl.pallas_call(
        kernel,
        out_shape=jax.ShapeDtypeStruct((c_out, B * L), x.dtype),
        grid_spec=pltpu.PrefetchScalarGridSpec(
            num_scalar_prefetch=0,
            grid=grid,
            in_specs=[
                pl.BlockSpec((c_in, bb * L), lambda i: (0, i)),                # x (lane-flattened)
                pl.BlockSpec((c_out, kernel_size * c_in), lambda i: (0, 0)),   # folded W
                pl.BlockSpec((c_out, 1), lambda i: (0, 0)),                    # folded b
            ],
            out_specs=pl.BlockSpec((c_out, bb * L), lambda i: (0, i)),
        ),
        compiler_params=pltpu.CompilerParams(
            dimension_semantics=("parallel",)),                                # batch blocks independent
    )(x_flat, w2, b2)

    # Un-flatten and trim to the true conv output length (no-op for odd K, e.g. K=3).
    out = jnp.transpose(out_flat.reshape(c_out, B, L), (1, 0, 2))
    return out[:, :, :out_len]


def _reference(x, weight, bias, gamma, beta, running_mean, running_var,
               *, kernel_size=3, dilation=1, eps=1e-5):
    pad = (kernel_size - 1) * dilation // 2
    out = lax.conv_general_dilated(
        x, weight, window_strides=(1,), padding=[(pad, pad)],
        rhs_dilation=(dilation,),
        dimension_numbers=("NCH", "OIH", "NCH"),
        precision=lax.Precision.HIGHEST)
    out = out + bias[None, :, None]
    inv = 1.0 / jnp.sqrt(running_var + eps)
    out = (out - running_mean[None, :, None]) * inv[None, :, None]
    out = out * gamma[None, :, None] + beta[None, :, None]
    return jax.nn.gelu(out, approximate=False)


if __name__ == "__main__":
    B, C_IN, C_OUT, L = 16, 4, 8, 128
    K, DIL = 3, 1

    key = jax.random.PRNGKey(0)
    kx, kw, kb, kg, kbe, km, kv = jax.random.split(key, 7)

    # Deterministic Conv1d-like init; non-trivial BN stats so the fold is exercised.
    fan_in = C_IN * K
    bound = 1.0 / math.sqrt(fan_in)
    weight = jax.random.uniform(kw, (C_OUT, C_IN, K), jnp.float32, -bound, bound)
    bias = jax.random.uniform(kb, (C_OUT,), jnp.float32, -bound, bound)
    gamma = 0.5 + jax.random.uniform(kg, (C_OUT,), jnp.float32, 0.0, 1.0)
    beta = 0.1 * jax.random.normal(kbe, (C_OUT,), jnp.float32)
    running_mean = 0.1 * jax.random.normal(km, (C_OUT,), jnp.float32)
    running_var = 0.5 + jax.random.uniform(kv, (C_OUT,), jnp.float32, 0.0, 1.0)

    def check(x_in, k, dil, name):
        out = jax.block_until_ready(temporal_conv_block(
            x_in, weight, bias, gamma, beta, running_mean, running_var,
            kernel_size=k, dilation=dil))
        ref = _reference(x_in, weight, bias, gamma, beta, running_mean, running_var,
                         kernel_size=k, dilation=dil)
        np.testing.assert_allclose(np.asarray(out), np.asarray(ref),
                                   rtol=1e-5, atol=1e-5, err_msg=name)

    # Main correctness check (tight tolerance: exact-GELU f32 path).
    x = jax.random.normal(kx, (B, C_IN, L), dtype=jnp.float32)
    check(x, K, DIL, "random-input")

    # Distinct per-batch constants: catches any halo leakage across batch segments
    # that the lane-flattened roll could introduce if the per-segment mask were wrong.
    x_const = jnp.broadcast_to(
        (1.0 + jnp.arange(B, dtype=jnp.float32))[:, None, None], (B, C_IN, L)
    ).astype(jnp.float32)
    check(x_const, K, DIL, "per-batch-constant")

    # Dilation > 1 exercises the general shift/mask path.
    check(x, K, 2, "dilation-2")

    print("KERNEL_OK")
</pallas_src>

<mosaic_0001>
module attributes {stable_mosaic.version = 11 : i64} {
  func.func @_temporal_conv_kernel(%arg0: i32, %arg1: memref<4x2048xf32, #tpu.memory_space<vmem>>, %arg2: memref<8x12xf32, #tpu.memory_space<vmem>>, %arg3: memref<8x1xf32, #tpu.memory_space<vmem>>, %arg4: memref<8x2048xf32, #tpu.memory_space<vmem>>) attributes {dimension_semantics = [#tpu.dimension_semantics<parallel>], iteration_bounds = array<i64: 1>, scalar_prefetch = 0 : i64, scratch_operands = 0 : i64, tpu.core_type = #tpu.core_type<tc>, window_params = [{transform_indices = @transform_0, window_bounds = array<i64: 4, 2048>}, {pipeline_mode = #tpu.pipeline_mode<synchronous>, transform_indices = @transform_1, window_bounds = array<i64: 8, 12>}, {pipeline_mode = #tpu.pipeline_mode<synchronous>, transform_indices = @transform_2, window_bounds = array<i64: 8, 1>}, {transform_indices = @transform_3, window_bounds = array<i64: 8, 2048>}]} {
    %c0 = arith.constant 0 : index
    %c0_0 = arith.constant 0 : index
    %0 = vector.load %arg1[%c0, %c0_0] : memref<4x2048xf32, #tpu.memory_space<vmem>>, vector<4x2048xf32>
    %1 = tpu.iota {dimensions = array<i32: 1>} : vector<4x2048xi32>
    %c127_i32 = arith.constant 127 : i32
    %2 = vector.broadcast %c127_i32 : i32 to vector<4x2048xi32>
    %3 = arith.andi %1, %2 : vector<4x2048xi32>
    %c1_i32 = arith.constant 1 : i32
    %4 = tpu.dynamic_rotate %0 by %c1_i32 dim 1 : vector<4x2048xf32>, i32 -> vector<4x2048xf32>
    %c-1_i32 = arith.constant -1 : i32
    %5 = vector.broadcast %c-1_i32 : i32 to vector<4x2048xi32>
    %6 = arith.addi %3, %5 : vector<4x2048xi32>
    %c0_i32 = arith.constant 0 : i32
    %7 = vector.broadcast %c0_i32 : i32 to vector<4x2048xi32>
    %8 = arith.cmpi sge, %6, %7 : vector<4x2048xi32>
    %c128_i32 = arith.constant 128 : i32
    %9 = vector.broadcast %c128_i32 : i32 to vector<4x2048xi32>
    %10 = arith.cmpi slt, %6, %9 : vector<4x2048xi32>
    %11 = arith.andi %8, %10 : vector<4x2048xi1>
    %cst = arith.constant 0.000000e+00 : f32
    %12 = vector.broadcast %cst : f32 to vector<4x2048xf32>
    %13 = arith.select %11, %4, %12 : vector<4x2048xi1>, vector<4x2048xf32>
    %c2047_i32 = arith.constant 2047 : i32
    %14 = tpu.dynamic_rotate %0 by %c2047_i32 dim 1 : vector<4x2048xf32>, i32 -> vector<4x2048xf32>
    %c1_i32_1 = arith.constant 1 : i32
    %15 = vector.broadcast %c1_i32_1 : i32 to vector<4x2048xi32>
    %16 = arith.addi %3, %15 : vector<4x2048xi32>
    %c0_i32_2 = arith.constant 0 : i32
    %17 = vector.broadcast %c0_i32_2 : i32 to vector<4x2048xi32>
    %18 = arith.cmpi sge, %16, %17 : vector<4x2048xi32>
    %c128_i32_3 = arith.constant 128 : i32
    %19 = vector.broadcast %c128_i32_3 : i32 to vector<4x2048xi32>
    %20 = arith.cmpi slt, %16, %19 : vector<4x2048xi32>
    %21 = arith.andi %18, %20 : vector<4x2048xi1>
    %cst_4 = arith.constant 0.000000e+00 : f32
    %22 = vector.broadcast %cst_4 : f32 to vector<4x2048xf32>
    %23 = arith.select %21, %14, %22 : vector<4x2048xi1>, vector<4x2048xf32>
    %24 = tpu.concatenate %13, %0, %23 in 0 : vector<4x2048xf32>, vector<4x2048xf32>, vector<4x2048xf32> -> vector<12x2048xf32>
    %c0_5 = arith.constant 0 : index
    %c0_6 = arith.constant 0 : index
    %25 = vector.load %arg2[%c0_5, %c0_6] : memref<8x12xf32, #tpu.memory_space<vmem>>, vector<8x12xf32>
    %cst_7 = arith.constant dense<0.000000e+00> : vector<8x2048xf32>
    %26 = tpu.matmul %25, %24, %cst_7 {dimension_numbers = #tpu.dot_dimension_numbers<[1], [0], [0], [1], [0, 0, 1, 1], [], []>} : vector<8x12xf32>, vector<12x2048xf32>, vector<8x2048xf32> -> vector<8x2048xf32>
    %c0_8 = arith.constant 0 : index
    %c0_9 = arith.constant 0 : index
    %27 = vector.load %arg3[%c0_8, %c0_9] : memref<8x1xf32, #tpu.memory_space<vmem>>, vector<8x1xf32>
    %28 = vector.broadcast %27 : vector<8x1xf32> to vector<8x2048xf32>
    %29 = arith.addf %26, %28 : vector<8x2048xf32>
    %cst_10 = arith.constant 0.707106769 : f32
    %30 = vector.broadcast %cst_10 : f32 to vector<8x2048xf32>
    %31 = arith.mulf %29, %30 : vector<8x2048xf32>
    %32 = math.absf %31 : vector<8x2048xf32>
    %cst_11 = arith.constant 0.327591091 : f32
    %33 = vector.broadcast %cst_11 : f32 to vector<8x2048xf32>
    %34 = arith.mulf %33, %32 : vector<8x2048xf32>
    %cst_12 = arith.constant 1.000000e+00 : f32
    %35 = vector.broadcast %cst_12 : f32 to vector<8x2048xf32>
    %36 = arith.addf %35, %34 : vector<8x2048xf32>
    %cst_13 = arith.constant 1.000000e+00 : f32
    %37 = vector.broadcast %cst_13 : f32 to vector<8x2048xf32>
    %38 = arith.divf %37, %36 : vector<8x2048xf32>
    %cst_14 = arith.constant 1.06140542 : f32
    %39 = vector.broadcast %cst_14 : f32 to vector<8x2048xf32>
    %40 = arith.mulf %39, %38 : vector<8x2048xf32>
    %cst_15 = arith.constant 1.45315206 : f32
    %41 = vector.broadcast %cst_15 : f32 to vector<8x2048xf32>
    %42 = arith.subf %40, %41 : vector<8x2048xf32>
    %43 = arith.mulf %42, %38 : vector<8x2048xf32>
    %cst_16 = arith.constant 1.42141378 : f32
    %44 = vector.broadcast %cst_16 : f32 to vector<8x2048xf32>
    %45 = arith.addf %43, %44 : vector<8x2048xf32>
    %46 = arith.mulf %45, %38 : vector<8x2048xf32>
    %cst_17 = arith.constant 0.284496725 : f32
    %47 = vector.broadcast %cst_17 : f32 to vector<8x2048xf32>
    %48 = arith.subf %46, %47 : vector<8x2048xf32>
    %49 = arith.mulf %48, %38 : vector<8x2048xf32>
    %cst_18 = arith.constant 0.254829586 : f32
    %50 = vector.broadcast %cst_18 : f32 to vector<8x2048xf32>
    %51 = arith.addf %49, %50 : vector<8x2048xf32>
    %52 = arith.mulf %51, %38 : vector<8x2048xf32>
    %cst_19 = arith.constant 0.000000e+00 : f32
    %53 = vector.broadcast %cst_19 : f32 to vector<8x2048xf32>
    %54 = arith.subf %53, %32 : vector<8x2048xf32>
    %55 = arith.mulf %54, %32 : vector<8x2048xf32>
    %56 = math.exp %55 : vector<8x2048xf32>
    %57 = arith.mulf %52, %56 : vector<8x2048xf32>
    %cst_20 = arith.constant 1.000000e+00 : f32
    %58 = vector.broadcast %cst_20 : f32 to vector<8x2048xf32>
    %59 = arith.subf %58, %57 : vector<8x2048xf32>
    %cst_21 = arith.constant 0.000000e+00 : f32
    %60 = vector.broadcast %cst_21 : f32 to vector<8x2048xf32>
    %61 = arith.cmpf oge, %31, %60 : vector<8x2048xf32>
    %cst_22 = arith.constant 0.000000e+00 : f32
    %62 = vector.broadcast %cst_22 : f32 to vector<8x2048xf32>
    %63 = arith.subf %62, %59 : vector<8x2048xf32>
    %64 = arith.select %61, %59, %63 : vector<8x2048xi1>, vector<8x2048xf32>
    %cst_23 = arith.constant 5.000000e-01 : f32
    %65 = vector.broadcast %cst_23 : f32 to vector<8x2048xf32>
    %66 = arith.mulf %65, %29 : vector<8x2048xf32>
    %cst_24 = arith.constant 1.000000e+00 : f32
    %67 = vector.broadcast %cst_24 : f32 to vector<8x2048xf32>
    %68 = arith.addf %67, %64 : vector<8x2048xf32>
    %69 = arith.mulf %66, %68 : vector<8x2048xf32>
    %c0_25 = arith.constant 0 : index
    %c0_26 = arith.constant 0 : index
    %70 = vector.load %arg4[%c0_25, %c0_26] : memref<8x2048xf32, #tpu.memory_space<vmem>>, vector<8x2048xf32>
    tpu.vector_store %arg4[%c0_25, %c0_26], %69 {strides = array<i32>} : memref<8x2048xf32, #tpu.memory_space<vmem>>, vector<8x2048xf32>,
    return
  }
  func.func @transform_0(%arg0: i32) -> (i32, i32) {
    %c0_i32 = arith.constant 0 : i32
    %c0_i32_0 = arith.constant 0 : i32
    return %c0_i32, %arg0 : i32, i32
  }
  func.func @transform_1(%arg0: i32) -> (i32, i32) {
    %c0_i32 = arith.constant 0 : i32
    %c0_i32_0 = arith.constant 0 : i32
    %c0_i32_1 = arith.constant 0 : i32
    return %c0_i32, %c0_i32_0 : i32, i32
  }
  func.func @transform_2(%arg0: i32) -> (i32, i32) {
    %c0_i32 = arith.constant 0 : i32
    %c0_i32_0 = arith.constant 0 : i32
    %c0_i32_1 = arith.constant 0 : i32
    return %c0_i32, %c0_i32_0 : i32, i32
  }
  func.func @transform_3(%arg0: i32) -> (i32, i32) {
    %c0_i32 = arith.constant 0 : i32
    %c0_i32_0 = arith.constant 0 : i32
    return %c0_i32, %arg0 : i32, i32
  }
}

</mosaic_0001>

<bundles_post_ra>
// kernel: tpu_custom_call.1
= control target key start
LH: loop header
LB: loop body
LE: loop exit
PB: predicated region body
PF: predicated region fallthrough
CT: control target
= control target key end

     0   :  { %8 = vsyncpa [#allocation3], 0  ;;  %s2254_s0 = inlined_call_operand.hbm [shape: f32[4,2048], index: 0, kind: input, shape index: {}]   ;;  %s2255_s1 = inlined_call_operand.vmem [shape: f32[8,12], index: 1, kind: input, shape index: {}]   ;;  %s2256_s2 = inlined_call_operand.vmem [shape: f32[8,1], index: 2, kind: input, shape index: {}]   ;;  %s2257_s3 = inlined_call_operand.hbm [shape: f32[8,2048], index: 3, kind: output, shape index: {}]  }
   0x1   :  { %9 = vsyncpa [#allocation4], 0  ;;  %s1660_s12 = smov [#allocation2]  }
   0x2   :  { %s16_s13 = sshll.u32 %s1660_s12, 4  ;;  %s17_s13 = int_to_ptr.vmem [resolvable:$true] %s16_s13 }
   0x3   :  { %s1624_s14 = scalar_lea.vmem %s17_s13, 1024  ;;  %p1629_p1 = scmp.lt.s32.totalorder %s17_s13, %s17_s13 }
   0x4   :  { %p1625_p0 = scmp.ne.s32.totalorder %s17_s13, %s1624_s14  ;;  %p1630_p2 = scmp.lt.s32.totalorder %s1624_s14, %s1624_s14 }
   0x6   :  { %p1631_p3 = por %p1630_p2, %p1629_p1 }
   0x8   :  { %p1632_p4 = pnand %p1631_p3, %p1625_p0 }
   0xa   :  { %1635 = shalt.err (!%p1632_p4)
}
   0xb   :  { %19 = dma.hbm_to_vmem [thread:$0]  %s2254_s0, 1024, %s17_s13, [#allocation3]  }
   0xc   :  { %1656 = dma.done.wait [#allocation3], 1024  }
   0xd   :  { %1657 = vsyncadd [#allocation3], 4294966272  ;;  %v1689_v0 = vld [vmem:[#allocation2 + $0x10] sm:$0xff]  ;;  %v1691_v1 = vld [vmem:[#allocation2 + $0x8] sm:$0xff]  ;;  %s1661_s17 = smov 127   ;;  %s1662_s0 = smov 1   ;;  %v35_v19 = vlaneseq }
   0xe   :  { %229 = vrot.lane.b32.xlu1 %v1689_v0, %s1661_s17  ;;  %225 = vrot.lane.b32.xlu0 %v1691_v1, %s1661_s17  ;;  %v77_v2 = vcombine.high %v1691_v1, %v1691_v1  ;;  %v1699_v3 = vld [vmem:[#allocation2] sm:$0xff]  ;;  %v1663_v5 = vmov 0.0   ;;  %v1710_v6 = vld [vmem:[#allocation2 + $0x38] sm:$0xff]  ;;  %v78_v8 = vcombine.high %v1689_v0, %v1689_v0  ;;  %v1742_v13 = vld [vmem:[#allocation2 + $0x28] sm:$0xff]  ;;  %v1664_v17 = vmov 0  }
   0xf   :  { %v76_v4 = vcombine.high %v1699_v3, %v1699_v3  ;;  %577 = vmatprep.mubr.f32.mxu1 %v1663_v5  ;;  %506 = vmatprep.mubr.f32.mxu0 %v1663_v5  ;;  %v83_v7 = vcombine.high %v1710_v6, %v1710_v6  ;;  %v1722_v9 = vld [vmem:[#allocation2 + $0x18] sm:$0xff]  ;;  %v1729_v11 = vld [vmem:[#allocation2 + $0x20] sm:$0xff]  ;;  %v81_v14 = vcombine.high %v1742_v13, %v1742_v13  ;;  %v1749_v15 = vld [vmem:[#allocation2 + $0x30] sm:$0xff]  ;;  %v1774_v20 = vand.u32 127, %v35_v19 }
  0x10   :  { %v79_v10 = vcombine.high %v1722_v9, %v1722_v9  ;;  %v80_v12 = vcombine.high %v1729_v11, %v1729_v11  ;;  %v82_v16 = vcombine.high %v1749_v15, %v1749_v15  ;;  %1535 = vset.pattern.permute.xlu0 %v1664_v17  ;;  %v384_v18 = vld [vmem:[%s2256_s2] sm:$0xff]  ;;  %vm366_vm3 = vcmask 1043456  }
  0x11   :  { %v39_v21 = vadd.s32 384, %v1774_v20  ;;  %v38_v22 = vadd.s32 256, %v1774_v20  ;;  %v37_v25 = vadd.s32 128, %v1774_v20  ;;  %vm253_vm0 = vcmp.lt.s32.totalorder %v1774_v20, 127 }
  0x12   :  { %227 = vrot.lane.b32.xlu1 %v77_v2, %s1661_s17  ;;  %92 = vrot.lane.b32.xlu0 %v1699_v3, %s1662_s0  ;;  %v40_v40 = vadd.s32 512, %v1774_v20  ;;  %v1790_v41 = vadd.s32 640, %v1774_v20  ;;  %v141_v45 = vadd.s32 4294967295, %v1774_v20  ;;  %vm124_vm5 = vcmp.lt.s32.totalorder %v1774_v20, 1 }
  0x13   :  { %v55_v23 = vand.u32 127, %v39_v21  ;;  %v54_v24 = vand.u32 127, %v38_v22  ;;  %v53_v28 = vand.u32 127, %v37_v25  ;;  %v270_v47 = vadd.s32 1, %v1774_v20 }
  0x14   :  { %v351_v49 = vcombine.low %v1691_v1, %v1691_v1  ;;  %v1801_v50 = vadd.s32 768, %v1774_v20  ;;  %v1804_v51 = vadd.s32 896, %v1774_v20  ;;  %v56_v52 = vand.u32 127, %v40_v40 }
  0x15   :  { %v273_v26 = vadd.s32 1, %v55_v23  ;;  %v272_v27 = vadd.s32 1, %v54_v24  ;;  %v271_v31 = vadd.s32 1, %v53_v28  ;;  %v143_v38 = vadd.s32 4294967295, %v54_v24 }
  0x16   :  { %94 = vrot.lane.b32.xlu1 %v76_v4, %s1662_s0  ;;  %223 = vrot.lane.b32.xlu0 %v76_v4, %s1661_s17  ;;  %v144_v39 = vadd.s32 4294967295, %v55_v23  ;;  %v142_v42 = vadd.s32 4294967295, %v53_v28  ;;  %v57_v53 = vand.u32 127, %v1790_v41  ;;  %vm157_vm9 = vcmp.ge.s32.totalorder %v141_v45, 0 }
  0x17   :  { %vm305_vm1 = vcmp.lt.s32.totalorder %v273_v26, 128  ;;  %vm304_vm2 = vcmp.lt.s32.totalorder %v272_v27, 128  ;;  %vm303_vm4 = vcmp.lt.s32.totalorder %v271_v31, 128  ;;  %vm159_vm6 = vcmp.ge.s32.totalorder %v143_v38, 0 }
  0x18   :  { %vm160_vm7 = vcmp.ge.s32.totalorder %v144_v39, 0  ;;  %vm158_vm8 = vcmp.ge.s32.totalorder %v142_v42, 0  ;;  %vm390_vm10 = vcmask 97280   ;;  %v350_v56 = vcombine.low %v1699_v3, %v1699_v3 }
  0x19   :  { %vm302_vm11 = vcmp.lt.s32.totalorder %v270_v47, 128  ;;  %v58_v62 = vand.u32 127, %v1801_v50  ;;  %v59_v63 = vand.u32 127, %v1804_v51  ;;  %v46_v45 = vadd.s32 1280, %v1774_v20 }
  0x1a   :  { %98 = vrot.lane.b32.xlu1 %v77_v2, %s1662_s0  ;;  %96 = vrot.lane.b32.xlu0 %v1691_v1, %s1662_s0  ;;  %v353_v51 = vcombine.low %v1722_v9, %v1722_v9 }
  0x1b   :  { %v276_v21 = vadd.s32 1, %v58_v62  ;;  %v277_v22 = vadd.s32 1, %v59_v63  ;;  %v148_v39 = vadd.s32 4294967295, %v59_v63 }
  0x1d   :  { %vm308_vm14 = vcmp.lt.s32.totalorder %v276_v21, 128  ;;  %vm309_vm15 = vcmp.lt.s32.totalorder %v277_v22, 128 }
  0x1e   :  { %122 = vrot.lane.b32.xlu1 %v83_v7, %s1662_s0  ;;  %221 = vrot.lane.b32.xlu0 %v1699_v3, %s1661_s17 }
  0x22   :  { %233 = vrot.lane.b32.xlu1 %v1722_v9, %s1661_s17  ;;  %231 = vrot.lane.b32.xlu0 %v78_v8, %s1661_s17 }
  0x26   :  { %237 = vrot.lane.b32.xlu1 %v1729_v11, %s1661_s17  ;;  %235 = vrot.lane.b32.xlu0 %v79_v10, %s1661_s17 }
  0x2a   :  { %102 = vrot.lane.b32.xlu1 %v78_v8, %s1662_s0  ;;  %100 = vrot.lane.b32.xlu0 %v1689_v0, %s1662_s0  ;;  %v274_v8 = vadd.s32 1, %v56_v52 }
  0x2c   :  { %vm306_vm12 = vcmp.lt.s32.totalorder %v274_v8, 128 }
  0x2e   :  { %106 = vrot.lane.b32.xlu1 %v79_v10, %s1662_s0  ;;  %104 = vrot.lane.b32.xlu0 %v1722_v9, %s1662_s0  ;;  %v275_v10 = vadd.s32 1, %v57_v53 }
  0x30   :  { %vm307_vm13 = vcmp.lt.s32.totalorder %v275_v10, 128 }
  0x32   :  { %241 = vrot.lane.b32.xlu1 %v1742_v13, %s1661_s17  ;;  %239 = vrot.lane.b32.xlu0 %v80_v12, %s1661_s17 }
  0x36   :  { %245 = vrot.lane.b32.xlu1 %v1749_v15, %s1661_s17  ;;  %243 = vrot.lane.b32.xlu0 %v81_v14, %s1661_s17 }
  0x3a   :  { %110 = vrot.lane.b32.xlu1 %v80_v12, %s1662_s0  ;;  %108 = vrot.lane.b32.xlu0 %v1729_v11, %s1662_s0 }
  0x3e   :  { %114 = vrot.lane.b32.xlu1 %v81_v14, %s1662_s0  ;;  %112 = vrot.lane.b32.xlu0 %v1742_v13, %s1662_s0 }
  0x42   :  { %249 = vrot.lane.b32.xlu1 %v1710_v6, %s1661_s17  ;;  %247 = vrot.lane.b32.xlu0 %v82_v16, %s1661_s17 }
  0x46   :  { %116 = vrot.lane.b32.xlu1 %v1749_v15, %s1662_s0  ;;  %251 = vrot.lane.b32.xlu0 %v83_v7, %s1661_s17  ;;  %v1827_v7 = vld [vmem:[%s2255_s1] sm:$0xff]  ;;  %s1665_s1 = smov [#allocation5]  }
  0x47   :  { %s1464_s21 = sshll.u32 %s1665_s1, 4  ;;  %s1465_s21 = int_to_ptr.vmem [resolvable:$true] %s1464_s21 }
  0x48   :  { %s1636_s22 = scalar_lea.vmem %s1465_s21, 2048  ;;  %p1641_p6 = scmp.lt.s32.totalorder %s1465_s21, %s1465_s21 }
  0x49   :  { %p1637_p5 = scmp.ne.s32.totalorder %s1465_s21, %s1636_s22  ;;  %p1642_p7 = scmp.lt.s32.totalorder %s1636_s22, %s1636_s22 }
  0x4a   :  { %120 = vrot.lane.b32.xlu1 %v1710_v6, %s1662_s0  ;;  %118 = vrot.lane.b32.xlu0 %v82_v16, %s1662_s0 }
  0x4b   :  { %p1643_p8 = por %p1642_p7, %p1641_p6 }
  0x4d   :  { %p1644_p9 = pnand %p1643_p8, %p1637_p5 }
  0x4e   :  { %387 = vperm.xlu0 %1535, %v384_v18  }
  0x80   :  { %v1779_v29 = vpop.permute.xlu1 %229  ;;  %v226_v30 = vpop.permute.xlu0 %225 }
  0x84   :  { %v228_v32 = vpop.permute.xlu1 %227  ;;  %v93_v33 = vpop.permute.xlu0 %92 }
  0x85   :  { %v266_v34 = vsel %vm253_vm0, %v226_v30, %v228_v32  ;;  %v265_v35 = vsel %vm253_vm0, %v228_v32, %v1779_v29  ;;  %v44_v32 = vadd.s32 1024, %v1774_v20 }
  0x86   :  { %v337_v36 = vsel %vm305_vm1, %v265_v35, 0.0  ;;  %v336_v37 = vsel %vm304_vm2, %v266_v34, 0.0  ;;  %v146_v34 = vadd.s32 4294967295, %v57_v53 }
  0x87   :  { %1476 = vmatprep.subr.msk.mxu1 %vm366_vm3, %v337_v36  ;;  %v147_v36 = vadd.s32 4294967295, %v58_v62  ;;  %v60_v42 = vand.u32 127, %v44_v32 }
  0x88   :  { %1477 = vmatpush1.msk.msra.mxu1 %vm366_vm3, %v336_v37  ;;  %v95_v43 = vpop.permute.xlu1 %94  ;;  %v224_v44 = vpop.permute.xlu0 %223  ;;  %vm162_vm2 = vcmp.ge.s32.totalorder %v146_v34, 0 }
  0x89   :  { %v267_v46 = vsel %vm253_vm0, %v224_v44, %v226_v30  ;;  %v139_v57 = vsel %vm124_vm5, %v93_v33, %v95_v43  ;;  %v145_v30 = vadd.s32 4294967295, %v56_v52  ;;  %v149_v21 = vadd.s32 4294967295, %v60_v42 }
  0x8a   :  { %v335_v48 = vsel %vm303_vm4, %v267_v46, 0.0  ;;  %v206_v12 = vsel %vm158_vm8, %v139_v57, 0.0  ;;  %v47_v46 = vadd.s32 1408, %v1774_v20  ;;  %vm163_vm4 = vcmp.ge.s32.totalorder %v147_v36, 0 }
  0x8b   :  { %1473 = vmatprep.subr.msk.mxu0 %vm366_vm3, %v335_v48  ;;  %v368_v23 = vsel %vm366_vm3, %v206_v12, %v1699_v3  ;;  %vm161_vm1 = vcmp.ge.s32.totalorder %v145_v30, 0 }
  0x8c   :  { %v1808_v54 = vpop.permute.xlu1 %98  ;;  %v97_v55 = vpop.permute.xlu0 %96 }
  0x8d   :  { %v137_v58 = vsel %vm124_vm5, %v97_v55, %v1808_v54  ;;  %v138_v59 = vsel %vm124_vm5, %v95_v43, %v97_v55  ;;  %v278_v55 = vadd.s32 1, %v60_v42  ;;  %v355_v42 = vcombine.low %v1742_v13, %v1742_v13 }
  0x8e   :  { %v207_v60 = vsel %vm159_vm6, %v138_v59, 0.0  ;;  %v208_v61 = vsel %vm160_vm7, %v137_v58, 0.0  ;;  %vm164_vm6 = vcmp.ge.s32.totalorder %v148_v39, 0  ;;  %v62_v59 = vand.u32 127, %v46_v45 }
  0x8f   :  { %v370_v2 = vsel %vm366_vm3, %v208_v61, %v1691_v1  ;;  %v369_v4 = vsel %vm366_vm3, %v207_v60, %v351_v49  ;;  %v63_v60 = vand.u32 127, %v47_v46  ;;  %vm310_vm7 = vcmp.lt.s32.totalorder %v278_v55, 128 }
  0x90   :  { %v1830_v14 = vpop.permute.xlu1 %122  ;;  %543 = vmatprep.subr.mxu1 %v370_v2  ;;  %v1832_v16 = vpop.permute.xlu0 %221  ;;  %v280_v10 = vadd.s32 1, %v62_v59 }
  0x91   :  { %v140_v1 = vsel %vm124_vm5, %v1830_v14, %v93_v33  ;;  %v268_v17 = vsel %vm253_vm0, %v1832_v16, %v224_v44  ;;  %544 = vmatpush1.msra.mxu1 %v369_v4  ;;  %v1858_v33 = vadd.s32 1152, %v1774_v20  ;;  %v352_v44 = vcombine.low %v1689_v0, %v1689_v0 }
  0x92   :  { %v205_v18 = vsel %vm157_vm9, %v140_v1, 0.0  ;;  %1478 = vmatmul.mubr.msk.f32.vlgmr.msra.gmra.mxu1 %vm390_vm10, %v1827_v7  ;;  %v334_v19 = vsel %vm302_vm11, %v268_v17, 0.0  ;;  %v281_v12 = vadd.s32 1, %v63_v60  ;;  %vm312_vm9 = vcmp.lt.s32.totalorder %v280_v10, 128 }
  0x93   :  { %1474 = vmatpush1.msk.msra.mxu0 %vm366_vm3, %v334_v19  ;;  %v367_v24 = vsel %vm366_vm3, %v205_v18, %v350_v56  ;;  %719 = vmatprep.mubr.f32.mxu1 %v1663_v5  ;;  %v61_v43 = vand.u32 127, %v1858_v33 }
  0x94   :  { %v234_v25 = vpop.permute.xlu1 %233  ;;  %472 = vmatprep.subr.mxu0 %v368_v23  ;;  %v232_v26 = vpop.permute.xlu0 %231  ;;  %vm313_vm11 = vcmp.lt.s32.totalorder %v281_v12, 128 }
  0x95   :  { %v263_v27 = vsel %vm253_vm0, %v232_v26, %v234_v25  ;;  %v264_v28 = vsel %vm253_vm0, %v1779_v29, %v232_v26  ;;  %473 = vmatpush1.msra.mxu0 %v367_v24  ;;  %v279_v56 = vadd.s32 1, %v61_v43  ;;  %v150_v24 = vadd.s32 4294967295, %v61_v43 }
  0x96   :  { %v338_v31 = vsel %vm306_vm12, %v264_v28, 0.0  ;;  %v339_v3 = vsel %vm307_vm13, %v263_v27, 0.0  ;;  %1475 = vmatmul.mubr.msk.f32.vlgmr.msra.gmra.mxu0 %vm390_vm10, %v1827_v7  ;;  %v151_v28 = vadd.s32 4294967295, %v62_v59  ;;  %vm165_vm12 = vcmp.ge.s32.totalorder %v149_v21, 0 }
  0x97   :  { %1479 = vmatprep.subr.msk.mxu0 %vm366_vm3, %v339_v3  ;;  %648 = vmatprep.mubr.f32.mxu0 %v1663_v5  ;;  %vm311_vm8 = vcmp.lt.s32.totalorder %v279_v56, 128  ;;  %v152_v3 = vadd.s32 4294967295, %v63_v60  ;;  %vm166_vm13 = vcmp.ge.s32.totalorder %v150_v24, 0 }
  0x98   :  { %v238_v29 = vpop.permute.xlu1 %237  ;;  %1480 = vmatpush1.msk.msra.mxu0 %vm366_vm3, %v338_v31  ;;  %v236_v35 = vpop.permute.xlu0 %235 }
  0x99   :  { %v261_v37 = vsel %vm253_vm0, %v236_v35, %v238_v29  ;;  %v262_v38 = vsel %vm253_vm0, %v234_v25, %v236_v35  ;;  %v1908_v25 = vadd.s32 1664, %v1774_v20  ;;  %v354_v35 = vcombine.low %v1729_v11, %v1729_v11 }
  0x9a   :  { %v340_v40 = vsel %vm308_vm14, %v262_v38, 0.0  ;;  %v341_v41 = vsel %vm309_vm15, %v261_v37, 0.0  ;;  %v51_v37 = vadd.s32 1920, %v1774_v20  ;;  %vm167_vm14 = vcmp.ge.s32.totalorder %v151_v28, 0 }
  0x9b   :  { %1482 = vmatprep.subr.msk.mxu1 %vm366_vm3, %v341_v41  ;;  %v65_v36 = vand.u32 127, %v1908_v25  ;;  %vm168_vm15 = vcmp.ge.s32.totalorder %v152_v3, 0 }
  0x9c   :  { %v103_v47 = vpop.permute.xlu1 %102  ;;  %1483 = vmatpush1.msk.msra.mxu1 %vm366_vm3, %v340_v40  ;;  %v101_v48 = vpop.permute.xlu0 %100 }
  0x9d   :  { %v135_v49 = vsel %vm124_vm5, %v101_v48, %v103_v47  ;;  %v136_v50 = vsel %vm124_vm5, %v1808_v54, %v101_v48 }
  0x9e   :  { %v209_v52 = vsel %vm161_vm1, %v136_v50, 0.0  ;;  %v210_v53 = vsel %vm162_vm2, %v135_v49, 0.0  ;;  %v283_v49 = vadd.s32 1, %v65_v36  ;;  %v67_v50 = vand.u32 127, %v51_v37 }
  0x9f   :  { %v372_v57 = vsel %vm366_vm3, %v210_v53, %v1689_v0  ;;  %v371_v58 = vsel %vm366_vm3, %v209_v52, %v352_v44 }
  0xa0   :  { %v107_v61 = vpop.permute.xlu1 %106  ;;  %614 = vmatprep.subr.mxu0 %v372_v57  ;;  %v105_v62 = vpop.permute.xlu0 %104  ;;  %vm315_vm2 = vcmp.lt.s32.totalorder %v283_v49, 128  ;;  %v285_v60 = vadd.s32 1, %v67_v50 }
  0xa1   :  { %v133_v54 = vsel %vm124_vm5, %v105_v62, %v107_v61  ;;  %v134_v63 = vsel %vm124_vm5, %v103_v47, %v105_v62  ;;  %615 = vmatpush1.msra.mxu0 %v371_v58 }
  0xa2   :  { %v211_v2 = vsel %vm163_vm4, %v134_v63, 0.0  ;;  %v212_v4 = vsel %vm164_vm6, %v133_v54, 0.0  ;;  %1481 = vmatmul.mubr.msk.f32.vlgmr.msra.gmra.mxu0 %vm390_vm10, %v1827_v7  ;;  %vm317_vm6 = vcmp.lt.s32.totalorder %v285_v60, 128 }
  0xa3   :  { %v374_v0 = vsel %vm366_vm3, %v212_v4, %v1722_v9  ;;  %v373_v8 = vsel %vm366_vm3, %v211_v2, %v353_v51  ;;  %790 = vmatprep.mubr.f32.mxu0 %v1663_v5  ;;  %v1904_v9 = vadd.s32 1536, %v1774_v20 }
  0xa4   :  { %v242_v1 = vpop.permute.xlu1 %241  ;;  %685 = vmatprep.subr.mxu1 %v374_v0  ;;  %v240_v17 = vpop.permute.xlu0 %239  ;;  %v156_v0 = vadd.s32 4294967295, %v67_v50 }
  0xa5   :  { %v259_v18 = vsel %vm253_vm0, %v240_v17, %v242_v1  ;;  %v260_v19 = vsel %vm253_vm0, %v238_v29, %v240_v17  ;;  %686 = vmatpush1.msra.mxu1 %v373_v8  ;;  %v64_v34 = vand.u32 127, %v1904_v9  ;;  %v50_v29 = vadd.s32 1792, %v1774_v20 }
  0xa6   :  { %v342_v22 = vsel %vm310_vm7, %v260_v19, 0.0  ;;  %v343_v23 = vsel %vm311_vm8, %v259_v18, 0.0  ;;  %1484 = vmatmul.mubr.msk.f32.vlgmr.msra.gmra.mxu1 %vm390_vm10, %v1827_v7  ;;  %v154_v8 = vadd.s32 4294967295, %v65_v36  ;;  %vm172_vm8 = vcmp.ge.s32.totalorder %v156_v0, 0 }
  0xa7   :  { %1485 = vmatprep.subr.msk.mxu0 %vm366_vm3, %v343_v23  ;;  %861 = vmatprep.mubr.f32.mxu1 %v1663_v5  ;;  %v282_v45 = vadd.s32 1, %v64_v34  ;;  %v66_v46 = vand.u32 127, %v50_v29 }
  0xa8   :  { %v246_v26 = vpop.permute.xlu1 %245  ;;  %1486 = vmatpush1.msk.msra.mxu0 %vm366_vm3, %v342_v22  ;;  %v244_v27 = vpop.permute.xlu0 %243 }
  0xa9   :  { %v257_v30 = vsel %vm253_vm0, %v244_v27, %v246_v26  ;;  %v258_v31 = vsel %vm253_vm0, %v242_v1, %v244_v27  ;;  %vm314_vm1 = vcmp.lt.s32.totalorder %v282_v45, 128  ;;  %v155_v10 = vadd.s32 4294967295, %v66_v46 }
  0xaa   :  { %v344_v32 = vsel %vm312_vm9, %v258_v31, 0.0  ;;  %v345_v33 = vsel %vm313_vm11, %v257_v30, 0.0  ;;  %vm170_vm9 = vcmp.ge.s32.totalorder %v154_v8, 0 }
  0xab   :  { %1488 = vmatprep.subr.msk.mxu1 %vm366_vm3, %v345_v33  ;;  %vm171_vm11 = vcmp.ge.s32.totalorder %v155_v10, 0 }
  0xac   :  { %v111_v38 = vpop.permute.xlu1 %110  ;;  %1489 = vmatpush1.msk.msra.mxu1 %vm366_vm3, %v344_v32  ;;  %v109_v39 = vpop.permute.xlu0 %108 }
  0xad   :  { %v131_v40 = vsel %vm124_vm5, %v109_v39, %v111_v38  ;;  %v132_v41 = vsel %vm124_vm5, %v107_v61, %v109_v39 }
  0xae   :  { %v213_v43 = vsel %vm165_vm12, %v132_v41, 0.0  ;;  %v214_v44 = vsel %vm166_vm13, %v131_v40, 0.0 }
  0xaf   :  { %v376_v47 = vsel %vm366_vm3, %v214_v44, %v1729_v11  ;;  %v375_v48 = vsel %vm366_vm3, %v213_v43, %v354_v35  ;;  %v284_v11 = vadd.s32 1, %v66_v46 }
  0xb0   :  { %v115_v51 = vpop.permute.xlu1 %114  ;;  %756 = vmatprep.subr.mxu0 %v376_v47  ;;  %v113_v52 = vpop.permute.xlu0 %112 }
  0xb1   :  { %v129_v53 = vsel %vm124_vm5, %v113_v52, %v115_v51  ;;  %v130_v55 = vsel %vm124_vm5, %v111_v38, %v113_v52  ;;  %757 = vmatpush1.msra.mxu0 %v375_v48  ;;  %vm316_vm4 = vcmp.lt.s32.totalorder %v284_v11, 128 }
  0xb2   :  { %v215_v56 = vsel %vm167_vm14, %v130_v55, 0.0  ;;  %v216_v57 = vsel %vm168_vm15, %v129_v53, 0.0  ;;  %1487 = vmatmul.mubr.msk.f32.vlgmr.msra.gmra.mxu0 %vm390_vm10, %v1827_v7 }
  0xb3   :  { %v378_v58 = vsel %vm366_vm3, %v216_v57, %v1742_v13  ;;  %v377_v59 = vsel %vm366_vm3, %v215_v56, %v355_v42  ;;  %932 = vmatprep.mubr.f32.mxu0 %v1663_v5  ;;  %v153_v13 = vadd.s32 4294967295, %v64_v34 }
  0xb4   :  { %v250_v61 = vpop.permute.xlu1 %249  ;;  %827 = vmatprep.subr.mxu1 %v378_v58  ;;  %v248_v62 = vpop.permute.xlu0 %247 }
  0xb5   :  { %v255_v54 = vsel %vm253_vm0, %v248_v62, %v250_v61  ;;  %v256_v63 = vsel %vm253_vm0, %v246_v26, %v248_v62  ;;  %828 = vmatpush1.msra.mxu1 %v377_v59  ;;  %vm169_vm7 = vcmp.ge.s32.totalorder %v153_v13, 0 }
  0xb6   :  { %v346_v2 = vsel %vm314_vm1, %v256_v63, 0.0  ;;  %v347_v4 = vsel %vm315_vm2, %v255_v54, 0.0  ;;  %1490 = vmatmul.mubr.msk.f32.vlgmr.msra.gmra.mxu1 %vm390_vm10, %v1827_v7 }
  0xb7   :  { %1491 = vmatprep.subr.msk.mxu0 %vm366_vm3, %v347_v4  ;;  %1003 = vmatprep.mubr.f32.mxu1 %v1663_v5  ;;  %v357_v5 = vcombine.low %v1710_v6, %v1710_v6 }
  0xb8   :  { %v117_v12 = vpop.permute.xlu1 %116  ;;  %1492 = vmatpush1.msk.msra.mxu0 %vm366_vm3, %v346_v2  ;;  %v252_v1 = vpop.permute.xlu0 %251 }
  0xb9   :  { %v254_v17 = vsel %vm253_vm0, %v250_v61, %v252_v1  ;;  %v269_v18 = vsel %vm253_vm0, %v252_v1, %v1832_v16  ;;  %v128_v19 = vsel %vm124_vm5, %v115_v51, %v117_v12  ;;  %v356_v16 = vcombine.low %v1749_v15, %v1749_v15 }
  0xba   :  { %v348_v21 = vsel %vm316_vm4, %v254_v17, 0.0  ;;  %v349_v22 = vsel %vm317_vm6, %v269_v18, 0.0  ;;  %v217_v24 = vsel %vm169_vm7, %v128_v19, 0.0 }
  0xbb   :  { %1494 = vmatprep.subr.msk.mxu1 %vm366_vm3, %v349_v22 }
  0xbc   :  { %v121_v23 = vpop.permute.xlu1 %120  ;;  %1495 = vmatpush1.msk.msra.mxu1 %vm366_vm3, %v348_v21  ;;  %v119_v9 = vpop.permute.xlu0 %118 }
  0xbd   :  { %v125_v25 = vsel %vm124_vm5, %v121_v23, %v1830_v14  ;;  %v126_v26 = vsel %vm124_vm5, %v119_v9, %v121_v23  ;;  %v127_v27 = vsel %vm124_vm5, %v117_v12, %v119_v9  ;;  %v379_v14 = vsel %vm366_vm3, %v217_v24, %v356_v16 }
  0xbe   :  { %v220_v28 = vsel %vm172_vm8, %v125_v25, 0.0  ;;  %v218_v30 = vsel %vm170_vm9, %v127_v27, 0.0  ;;  %v219_v31 = vsel %vm171_vm11, %v126_v26, 0.0 }
  0xbf   :  { %v380_v3 = vsel %vm366_vm3, %v218_v30, %v1749_v15  ;;  %v382_v32 = vsel %vm366_vm3, %v220_v28, %v1710_v6  ;;  %v381_v33 = vsel %vm366_vm3, %v219_v31, %v357_v5 }
  0xc0   :  { %898 = vmatprep.subr.mxu0 %v380_v3  ;;  %969 = vmatprep.subr.mxu1 %v382_v32 }
  0xc1   :  { %899 = vmatpush1.msra.mxu0 %v379_v14  ;;  %970 = vmatpush1.msra.mxu1 %v381_v33 }
  0xc2   :  { %1493 = vmatmul.mubr.msk.f32.vlgmr.msra.gmra.mxu0 %vm390_vm10, %v1827_v7  ;;  %1496 = vmatmul.mubr.msk.f32.vlgmr.msra.gmra.mxu1 %vm390_vm10, %v1827_v7 }
  0xc9   :  { %v1985_v20 = vpop.permute.xlu0 %387 }
 0x152   :  { %v579_v15 = vpop.f32.mrf.mxu1 }
 0x153   :  { %v580_v34 = vadd.f32 %v579_v15, %v1985_v20 }
 0x154   :  { %v581_v6 = vpop.f32.mrf.mxu1 }
 0x155   :  { %v1988_v29 = vmul.f32 0.70710677, %v580_v34  ;;  %v582_v35 = vadd.f32 %v581_v6, %v1985_v20  ;;  %v2022_v1 = vmul.f32 0.5, %v580_v34 }
 0x156   :  { %v508_v36 = vpop.f32.mrf.mxu0 }
 0x157   :  { %v1028_v37 = vand.u32 2147483647, %v1988_v29  ;;  %v1992_v38 = vmul.f32 0.70710677, %v582_v35  ;;  %v509_v39 = vadd.f32 %v508_v36, %v1985_v20  ;;  %v2024_v17 = vmul.f32 0.5, %v582_v35 }
 0x158   :  { %v510_v40 = vpop.f32.mrf.mxu0  ;;  %vm1348_vm0 = vcmp.ge.f32.partialorder %v1988_v29, 0.0 }
 0x159   :  { %v1044_v41 = vmul.f32 0.3275911, %v1028_v37  ;;  %v1029_v7 = vand.u32 2147483647, %v1992_v38  ;;  %v1996_v42 = vmul.f32 0.70710677, %v509_v39  ;;  %v1999_v43 = vadd.f32 %v510_v40, %v1985_v20 }
 0x15a   :  { %v1252_v49 = vsub.f32 0.0, %v1028_v37  ;;  %v2037_v26 = vmul.f32 0.5, %v509_v39  ;;  %vm1349_vm3 = vcmp.ge.f32.partialorder %v1992_v38, 0.0 }
 0x15b   :  { %v1060_v44 = vadd.f32 1.0, %v1044_v41  ;;  %v1045_v45 = vmul.f32 0.3275911, %v1029_v7  ;;  %v1026_v46 = vand.u32 2147483647, %v1996_v42  ;;  %v1253_v52 = vsub.f32 0.0, %v1029_v7 }
 0x15c   :  { %v2003_v47 = vmul.f32 0.70710677, %v1999_v43  ;;  %v1268_v56 = vmul.f32 %v1252_v49, %v1028_v37  ;;  %vm1346_vm5 = vcmp.ge.f32.partialorder %v1996_v42, 0.0 }
 0x15d   :  { %1552 = vrcp.f32 %v1060_v44  ;;  %v1061_v48 = vadd.f32 1.0, %v1045_v45  ;;  %v1042_v50 = vmul.f32 0.3275911, %v1026_v46  ;;  %v1269_v59 = vmul.f32 %v1253_v52, %v1029_v7 }
 0x15e   :  { %v1027_v51 = vand.u32 2147483647, %v2003_v47  ;;  %v1286_v62 = vmul.f32 1.442695, %v1268_v56  ;;  %v1250_v54 = vsub.f32 0.0, %v1026_v46  ;;  %v2056_v56 = vmul.f32 0.5, %v1999_v43 }
 0x15f   :  { %1554 = vrcp.f32 %v1061_v48  ;;  %v1058_v53 = vadd.f32 1.0, %v1042_v50  ;;  %v1288_v8 = vmul.f32 1.442695, %v1269_v59  ;;  %vm1347_vm10 = vcmp.ge.f32.partialorder %v2003_v47, 0.0 }
 0x160   :  { %v1043_v55 = vmul.f32 0.3275911, %v1027_v51  ;;  %v1251_v4 = vsub.f32 0.0, %v1027_v51  ;;  %v1266_v22 = vmul.f32 %v1250_v54, %v1026_v46 }
 0x161   :  { %1556 = vrcp.f32 %v1058_v53 }
 0x162   :  { %v1059_v57 = vadd.f32 1.0, %v1043_v55  ;;  %v650_v11 = vpop.f32.mrf.mxu0  ;;  %v1267_v16 = vmul.f32 %v1251_v4, %v1027_v51  ;;  %v1282_v14 = vmul.f32 1.442695, %v1266_v22 }
 0x163   :  { %v2007_v58 = vadd.f32 %v650_v11, %v1985_v20 }
 0x164   :  { %v652_v60 = vpop.f32.mrf.mxu0  ;;  %1558 = vrcp.f32 %v1059_v57  ;;  %v1284_v36 = vmul.f32 1.442695, %v1267_v16 }
 0x165   :  { %v2010_v61 = vmul.f32 0.70710677, %v2007_v58  ;;  %v2013_v63 = vadd.f32 %v652_v60, %v1985_v20  ;;  %1560 = vpow2.f32 %v1286_v62 }
 0x166   :  { %v721_v2 = vpop.f32.mrf.mxu1  ;;  %1562 = vpow2.f32 %v1288_v8 }
 0x167   :  { %v1030_v13 = vand.u32 2147483647, %v2010_v61  ;;  %v2017_v0 = vadd.f32 %v721_v2, %v1985_v20  ;;  %v2020_v10 = vmul.f32 0.70710677, %v2013_v63  ;;  %vm1350_vm12 = vcmp.ge.f32.partialorder %v2010_v61, 0.0 }
 0x168   :  { %v723_v12 = vpop.f32.mrf.mxu1 }
 0x169   :  { %v1046_v18 = vmul.f32 0.3275911, %v1030_v13  ;;  %v2027_v19 = vmul.f32 0.70710677, %v2017_v0  ;;  %v1031_v5 = vand.u32 2147483647, %v2020_v10  ;;  %v2033_v23 = vadd.f32 %v723_v12, %v1985_v20 }
 0x16a   :  { %v2029_v21 = vpop.eup %1552  ;;  %v1254_v3 = vsub.f32 0.0, %v1030_v13  ;;  %vm1351_vm13 = vcmp.ge.f32.partialorder %v2020_v10, 0.0 }
 0x16b   :  { %v1108_v9 = vmul.f32 1.0614054, %v2029_v21  ;;  %v1062_v24 = vadd.f32 1.0, %v1046_v18  ;;  %v1032_v25 = vand.u32 2147483647, %v2027_v19  ;;  %v1255_v34 = vsub.f32 0.0, %v1031_v5 }
 0x16c   :  { %v1047_v27 = vmul.f32 0.3275911, %v1031_v5  ;;  %v2040_v28 = vmul.f32 0.70710677, %v2033_v23  ;;  %v2042_v30 = vpop.eup %1554  ;;  %v1270_v45 = vmul.f32 %v1254_v3, %v1030_v13  ;;  %vm1352_vm14 = vcmp.ge.f32.partialorder %v2027_v19, 0.0 }
 0x16d   :  { %v1499_v31 = vadd.f32 -1.4531521, %v1108_v9  ;;  %1564 = vrcp.f32 %v1062_v24  ;;  %v1048_v32 = vmul.f32 0.3275911, %v1032_v25  ;;  %v1109_v33 = vmul.f32 1.0614054, %v2042_v30 }
 0x16e   :  { %v1063_v15 = vadd.f32 1.0, %v1047_v27  ;;  %v2045_v6 = vpop.eup %1556  ;;  %v1033_v39 = vand.u32 2147483647, %v2040_v28  ;;  %v1256_v7 = vsub.f32 0.0, %v1032_v25  ;;  %v1271_v51 = vmul.f32 %v1255_v34, %v1031_v5 }
 0x16f   :  { %v1140_v35 = vmul.f32 %v2029_v21, %v1499_v31  ;;  %v1064_v37 = vadd.f32 1.0, %v1048_v32  ;;  %v1500_v40 = vadd.f32 -1.4531521, %v1109_v33  ;;  %v1106_v41 = vmul.f32 1.0614054, %v2045_v6 }
 0x170   :  { %1566 = vrcp.f32 %v1063_v15  ;;  %v1049_v46 = vmul.f32 0.3275911, %v1033_v39  ;;  %v1272_v60 = vmul.f32 %v1256_v7, %v1032_v25  ;;  %v1257_v62 = vsub.f32 0.0, %v1033_v39 }
 0x171   :  { %v1156_v44 = vadd.f32 1.4214138, %v1140_v35  ;;  %1568 = vrcp.f32 %v1064_v37  ;;  %v2050_v48 = vpop.eup %1558  ;;  %v1141_v49 = vmul.f32 %v2042_v30, %v1500_v40  ;;  %v1497_v50 = vadd.f32 -1.4531521, %v1106_v41 }
 0x172   :  { %1570 = vpow2.f32 %v1282_v14  ;;  %v792_v52 = vpop.f32.mrf.mxu0  ;;  %v1107_v55 = vmul.f32 1.0614054, %v2050_v48  ;;  %v1065_v57 = vadd.f32 1.0, %v1049_v46  ;;  %v1290_v13 = vmul.f32 1.442695, %v1270_v45  ;;  %v1561_v22 = vpop.eup %1560 }
 0x173   :  { %v1172_v53 = vmul.f32 %v2029_v21, %v1156_v44  ;;  %v1157_v11 = vadd.f32 1.4214138, %v1141_v49  ;;  %v1138_v59 = vmul.f32 %v2045_v6, %v1497_v50  ;;  %1572 = vpow2.f32 %v1284_v36  ;;  %v1563_v3 = vpop.eup %1562 }
 0x174   :  { %v794_v54 = vpop.f32.mrf.mxu0  ;;  %v1498_v4 = vadd.f32 -1.4531521, %v1107_v55  ;;  %v1292_v18 = vmul.f32 1.442695, %v1271_v51  ;;  %1574 = vrcp.f32 %v1065_v57  ;;  %v2063_v9 = vadd.f32 %v792_v52, %v1985_v20 }
 0x175   :  { %v1515_v2 = vadd.f32 -0.28449672, %v1172_v53  ;;  %v1173_v8 = vmul.f32 %v2042_v30, %v1157_v11  ;;  %v1154_v12 = vadd.f32 1.4214138, %v1138_v59  ;;  %v2066_v16 = vadd.f32 %v794_v54, %v1985_v20 }
 0x176   :  { %v1139_v5 = vmul.f32 %v2050_v48, %v1498_v4  ;;  %v1294_v27 = vmul.f32 1.442695, %v1272_v60  ;;  %v1273_v31 = vmul.f32 %v1257_v62, %v1033_v39  ;;  %1576 = vpow2.f32 %v1290_v13 }
 0x177   :  { %v1204_v43 = vmul.f32 %v2029_v21, %v1515_v2  ;;  %v1516_v24 = vadd.f32 -0.28449672, %v1173_v8  ;;  %v1170_v25 = vmul.f32 %v2045_v6, %v1154_v12  ;;  %v2070_v14 = vmul.f32 0.70710677, %v2063_v9 }
 0x178   :  { %v1155_v33 = vadd.f32 1.4214138, %v1139_v5  ;;  %1578 = vpow2.f32 %v1292_v18  ;;  %v2077_v36 = vmul.f32 0.70710677, %v2066_v16  ;;  %v1296_v45 = vmul.f32 1.442695, %v1273_v31 }
 0x179   :  { %v1220_v32 = vadd.f32 0.2548296, %v1204_v43  ;;  %v1205_v34 = vmul.f32 %v2042_v30, %v1516_v24  ;;  %v1513_v35 = vadd.f32 -0.28449672, %v1170_v25  ;;  %v2083_v41 = vand.u32 2147483647, %v2070_v14 }
 0x17a   :  { %v2072_v15 = vpop.eup %1564  ;;  %v1171_v39 = vmul.f32 %v2050_v48, %v1155_v33  ;;  %1580 = vpow2.f32 %v1294_v27  ;;  %v2095_v11 = vand.u32 2147483647, %v2077_v36  ;;  %vm1353_vm15 = vcmp.ge.f32.partialorder %v2040_v28, 0.0 }
 0x17b   :  { %v1236_v37 = vmul.f32 %v2029_v21, %v1220_v32  ;;  %v1110_v40 = vmul.f32 1.0614054, %v2072_v15  ;;  %v1221_v7 = vadd.f32 0.2548296, %v1205_v34  ;;  %v1202_v44 = vmul.f32 %v2045_v6, %v1513_v35 }
 0x17c   :  { %v1514_v50 = vadd.f32 -0.28449672, %v1171_v39  ;;  %v1050_v21 = vmul.f32 0.3275911, %v2083_v41  ;;  %1582 = vpow2.f32 %v1296_v45  ;;  %vm1354_vm1 = vcmp.ge.f32.partialorder %v2070_v14, 0.0 }
 0x17d   :  { %v2086_v46 = vpop.eup %1566  ;;  %v1316_v49 = vmul.f32 %v1561_v22, %v1236_v37  ;;  %v1501_v51 = vadd.f32 -1.4531521, %v1110_v40  ;;  %v1237_v53 = vmul.f32 %v2042_v30, %v1221_v7  ;;  %v1218_v55 = vadd.f32 0.2548296, %v1202_v44 }
 0x17e   :  { %v2090_v52 = vpop.eup %1568  ;;  %v1111_v57 = vmul.f32 1.0614054, %v2086_v46  ;;  %v1203_v62 = vmul.f32 %v2050_v48, %v1514_v50  ;;  %v1066_v8 = vadd.f32 1.0, %v1050_v21  ;;  %vm1355_vm2 = vcmp.ge.f32.partialorder %v2077_v36, 0.0 }
 0x17f   :  { %v1571_v59 = vpop.eup %1570  ;;  %v1332_v60 = vsub.f32 1.0, %v1316_v49  ;;  %v1142_v54 = vmul.f32 %v2072_v15, %v1501_v51  ;;  %v1112_v2 = vmul.f32 1.0614054, %v2090_v52  ;;  %v1317_v4 = vmul.f32 %v1563_v3, %v1237_v53 }
 0x180   :  { %v1234_v13 = vmul.f32 %v2045_v6, %v1218_v55  ;;  %v1502_v30 = vadd.f32 -1.4531521, %v1111_v57  ;;  %v1219_v18 = vadd.f32 0.2548296, %v1203_v62  ;;  %v1573_v43 = vpop.eup %1572  ;;  %1584 = vrcp.f32 %v1066_v8 }
 0x181   :  { %v1364_v12 = vsub.f32 0.0, %v1332_v60  ;;  %v1158_v22 = vadd.f32 1.4214138, %v1142_v54  ;;  %v1333_v5 = vsub.f32 1.0, %v1317_v4  ;;  %v1503_v27 = vadd.f32 -1.4531521, %v1112_v2  ;;  %v2104_v31 = vpop.eup %1574 }
 0x182   :  { %v1314_v24 = vmul.f32 %v1571_v59, %v1234_v13  ;;  %v1143_v25 = vmul.f32 %v2086_v46, %v1502_v30  ;;  %v1235_v6 = vmul.f32 %v2050_v48, %v1219_v18  ;;  %v1113_v44 = vmul.f32 1.0614054, %v2104_v31  ;;  %v863_v59 = vpop.f32.mrf.mxu1 }
 0x183   :  { %v1380_v3 = vsel %vm1348_vm0, %v1332_v60, %v1364_v12  ;;  %v1174_v32 = vmul.f32 %v2072_v15, %v1158_v22  ;;  %v1365_v34 = vsub.f32 0.0, %v1333_v5  ;;  %v1144_v7 = vmul.f32 %v2090_v52, %v1503_v27  ;;  %v1577_v45 = vpop.eup %1576 }
 0x184   :  { %v1412_v33 = vadd.f32 1.0, %v1380_v3  ;;  %v1330_v35 = vsub.f32 1.0, %v1314_v24  ;;  %v1159_v37 = vadd.f32 1.4214138, %v1143_v25  ;;  %v1315_v39 = vmul.f32 %v1573_v43, %v1235_v6 }
 0x185   :  { %v1517_v40 = vadd.f32 -0.28449672, %v1174_v32  ;;  %v1381_v29 = vsel %vm1349_vm3, %v1333_v5, %v1365_v34  ;;  %v1579_v51 = vpop.eup %1578  ;;  %v1160_v57 = vadd.f32 1.4214138, %v1144_v7  ;;  %v1504_v54 = vadd.f32 -1.4531521, %v1113_v44 }
 0x186   :  { %v1428_v49 = vmul.f32 %v1412_v33, %v2022_v1  ;;  %v1362_v48 = vsub.f32 0.0, %v1330_v35  ;;  %v1175_v50 = vmul.f32 %v2086_v46, %v1159_v37  ;;  %v1413_v21 = vadd.f32 1.0, %v1381_v29  ;;  %v865_v37 = vpop.f32.mrf.mxu1 }
 0x187   :  { %v1331_v53 = vsub.f32 1.0, %v1315_v39  ;;  %v1206_v55 = vmul.f32 %v2072_v15, %v1517_v40  ;;  %v1258_v1 = vsub.f32 0.0, %v2083_v41  ;;  %v1581_v38 = vpop.eup %1580  ;;  %v1176_v12 = vmul.f32 %v2090_v52, %v1160_v57 }
 0x188   :  { %1444 = vst [vmem:[#allocation5 + $0x10] sm:$0xff] %v1428_v49  ;;  %v1378_v60 = vsel %vm1346_vm5, %v1330_v35, %v1362_v48  ;;  %v1518_v62 = vadd.f32 -0.28449672, %v1175_v50  ;;  %v1429_v2 = vmul.f32 %v1413_v21, %v2024_v17  ;;  %v1145_v18 = vmul.f32 %v2104_v31, %v1504_v54 }
 0x189   :  { %v1410_v4 = vadd.f32 1.0, %v1378_v60  ;;  %v1363_v13 = vsub.f32 0.0, %v1331_v53  ;;  %v1222_v30 = vadd.f32 0.2548296, %v1206_v55  ;;  %v2125_v22 = vadd.f32 %v863_v59, %v1985_v20  ;;  %v1583_v35 = vpop.eup %1582 }
 0x18a   :  { %v1207_v8 = vmul.f32 %v2086_v46, %v1518_v62  ;;  %1445 = vst [vmem:[#allocation5 + $0x18] sm:$0xff] %v1429_v2  ;;  %v1051_v5 = vmul.f32 0.3275911, %v2095_v11  ;;  %v1519_v27 = vadd.f32 -0.28449672, %v1176_v12  ;;  %v1274_v3 = vmul.f32 %v1258_v1, %v2083_v41 }
 0x18b   :  { %v1426_v42 = vmul.f32 %v1410_v4, %v2037_v26  ;;  %v1379_v43 = vsel %vm1347_vm10, %v1331_v53, %v1363_v13  ;;  %v1238_v17 = vmul.f32 %v2072_v15, %v1222_v30  ;;  %v1398_v32 = vmul.f32 0.5, %v2007_v58 }
 0x18c   :  { %v1411_v24 = vadd.f32 1.0, %v1379_v43  ;;  %v1223_v25 = vadd.f32 0.2548296, %v1207_v8  ;;  %v1161_v33 = vadd.f32 1.4214138, %v1145_v18  ;;  %v1067_v34 = vadd.f32 1.0, %v1051_v5 }
 0x18d   :  { %1442 = vst [vmem:[#allocation5] sm:$0xff] %v1426_v42  ;;  %v1318_v6 = vmul.f32 %v1577_v45, %v1238_v17  ;;  %v1208_v15 = vmul.f32 %v2090_v52, %v1519_v27  ;;  %v1399_v40 = vmul.f32 0.5, %v2013_v63  ;;  %v2140_v7 = vpop.eup %1584  ;;  %v1298_v45 = vmul.f32 1.442695, %v1274_v3 }
 0x18e   :  { %v1427_v26 = vmul.f32 %v1411_v24, %v2056_v56  ;;  %v1239_v47 = vmul.f32 %v2086_v46, %v1223_v25  ;;  %v1177_v41 = vmul.f32 %v2104_v31, %v1161_v33  ;;  %1586 = vrcp.f32 %v1067_v34  ;;  %v934_v24 = vpop.f32.mrf.mxu0  ;;  %v1005_v25 = vpop.f32.mrf.mxu1 }
 0x18f   :  { %v1334_v39 = vsub.f32 1.0, %v1318_v6  ;;  %v1224_v44 = vadd.f32 0.2548296, %v1208_v15  ;;  %v2143_v56 = vmul.f32 0.70710677, %v2125_v22  ;;  %v2147_v48 = vadd.f32 %v865_v37, %v1985_v20 }
 0x190   :  { %1443 = vst [vmem:[#allocation5 + $0x8] sm:$0xff] %v1427_v26  ;;  %v1319_v58 = vmul.f32 %v1579_v51, %v1239_v47  ;;  %v1520_v46 = vadd.f32 -0.28449672, %v1177_v41  ;;  %v1114_v29 = vmul.f32 1.0614054, %v2140_v7  ;;  %v1259_v57 = vsub.f32 0.0, %v2095_v11 }
 0x191   :  { %v1366_v49 = vsub.f32 0.0, %v1334_v39  ;;  %v1240_v50 = vmul.f32 %v2090_v52, %v1224_v44  ;;  %v1036_v21 = vand.u32 2147483647, %v2143_v56  ;;  %1588 = vpow2.f32 %v1298_v45 }
 0x192   :  { %v1335_v63 = vsub.f32 1.0, %v1319_v58  ;;  %v1209_v53 = vmul.f32 %v2104_v31, %v1520_v46  ;;  %v1505_v55 = vadd.f32 -1.4531521, %v1114_v29  ;;  %v2158_v52 = vmul.f32 0.70710677, %v2147_v48 }
 0x193   :  { %v1382_v51 = vsel %vm1350_vm12, %v1334_v39, %v1366_v49  ;;  %v1320_v62 = vmul.f32 %v1581_v38, %v1240_v50  ;;  %v1052_v54 = vmul.f32 0.3275911, %v1036_v21  ;;  %v1275_v38 = vmul.f32 %v1259_v57, %v2095_v11 }
 0x194   :  { %v1414_v59 = vadd.f32 1.0, %v1382_v51  ;;  %v1367_v60 = vsub.f32 0.0, %v1335_v63  ;;  %v1225_v1 = vadd.f32 0.2548296, %v1209_v53  ;;  %v1146_v2 = vmul.f32 %v2140_v7, %v1505_v55  ;;  %v936_v53 = vpop.f32.mrf.mxu0 }
 0x195   :  { %v1336_v13 = vsub.f32 1.0, %v1320_v62  ;;  %v1068_v30 = vadd.f32 1.0, %v1052_v54  ;;  %v1037_v43 = vand.u32 2147483647, %v2158_v52  ;;  %v1400_v3 = vmul.f32 0.5, %v2017_v0 }
 0x196   :  { %v1430_v4 = vmul.f32 %v1414_v59, %v1398_v32  ;;  %v1383_v61 = vsel %vm1351_vm13, %v1335_v63, %v1367_v60  ;;  %v1241_v12 = vmul.f32 %v2104_v31, %v1225_v1  ;;  %v1162_v18 = vadd.f32 1.4214138, %v1146_v2 }
 0x197   :  { %v1415_v8 = vadd.f32 1.0, %v1383_v61  ;;  %v1368_v42 = vsub.f32 0.0, %v1336_v13  ;;  %1590 = vrcp.f32 %v1068_v30  ;;  %v1053_v31 = vmul.f32 0.3275911, %v1037_v43 }
 0x198   :  { %1446 = vst [vmem:[#allocation5 + $0x20] sm:$0xff] %v1430_v4  ;;  %v1321_v5 = vmul.f32 %v1583_v35, %v1241_v12  ;;  %v1178_v10 = vmul.f32 %v2140_v7, %v1162_v18  ;;  %v1300_v33 = vmul.f32 1.442695, %v1275_v38  ;;  %v1260_v26 = vsub.f32 0.0, %v1036_v21  ;;  %v1007_v4 = vpop.f32.mrf.mxu1 }
 0x199   :  { %v1431_v17 = vmul.f32 %v1415_v8, %v1399_v40  ;;  %v1384_v27 = vsel %vm1352_vm14, %v1336_v13, %v1368_v42  ;;  %v1069_v47 = vadd.f32 1.0, %v1053_v31  ;;  %v2171_v19 = vadd.f32 %v934_v24, %v1985_v20 }
 0x19a   :  { %v1416_v6 = vadd.f32 1.0, %v1384_v27  ;;  %v1337_v11 = vsub.f32 1.0, %v1321_v5  ;;  %v1521_v32 = vadd.f32 -0.28449672, %v1178_v10  ;;  %v2174_v35 = vadd.f32 %v1005_v25, %v1985_v20 }
 0x19b   :  { %1447 = vst [vmem:[#allocation5 + $0x28] sm:$0xff] %v1431_v17  ;;  %v2168_v34 = vpop.eup %1586  ;;  %1592 = vrcp.f32 %v1069_v47  ;;  %v2180_v40 = vmul.f32 0.70710677, %v2171_v19  ;;  %v1401_v49 = vmul.f32 0.5, %v2033_v23  ;;  %v1276_v50 = vmul.f32 %v1260_v26, %v1036_v21 }
 0x19c   :  { %v1432_v15 = vmul.f32 %v1416_v6, %v1400_v3  ;;  %v1369_v37 = vsub.f32 0.0, %v1337_v11  ;;  %v1210_v0 = vmul.f32 %v2140_v7, %v1521_v32  ;;  %v1115_v39 = vmul.f32 1.0614054, %v2168_v34 }
 0x19d   :  { %v2183_v45 = vmul.f32 0.70710677, %v2174_v35  ;;  %1594 = vpow2.f32 %v1300_v33  ;;  %v1038_v29 = vand.u32 2147483647, %v2180_v40  ;;  %v1261_v59 = vsub.f32 0.0, %v1037_v43 }
 0x19e   :  { %1448 = vst [vmem:[#allocation5 + $0x30] sm:$0xff] %v1432_v15  ;;  %v1385_v41 = vsel %vm1353_vm15, %v1337_v11, %v1369_v37  ;;  %v1226_v58 = vadd.f32 0.2548296, %v1210_v0  ;;  %v1506_v44 = vadd.f32 -1.4531521, %v1115_v39  ;;  %v1589_v55 = vpop.eup %1588  ;;  %v2191_v2 = vadd.f32 %v936_v53, %v1985_v20 }
 0x19f   :  { %v1417_v46 = vadd.f32 1.0, %v1385_v41  ;;  %v1040_v51 = vand.u32 2147483647, %v2183_v45  ;;  %v1054_v60 = vmul.f32 0.3275911, %v1038_v29  ;;  %v1277_v12 = vmul.f32 %v1261_v59, %v1037_v43 }
 0x1a0   :  { %v1242_v63 = vmul.f32 %v2140_v7, %v1226_v58  ;;  %v1147_v28 = vmul.f32 %v2168_v34, %v1506_v44  ;;  %v1302_v13 = vmul.f32 1.442695, %v1276_v50  ;;  %v2198_v18 = vmul.f32 0.70710677, %v2191_v2 }
 0x1a1   :  { %v1433_v57 = vmul.f32 %v1417_v46, %v1401_v49  ;;  %v1056_v1 = vmul.f32 0.3275911, %v1040_v51  ;;  %v1070_v23 = vadd.f32 1.0, %v1054_v60  ;;  %v2201_v17 = vadd.f32 %v1007_v4, %v1985_v20 }
 0x1a2   :  { %v1322_v62 = vmul.f32 %v1589_v55, %v1242_v63  ;;  %v1163_v54 = vadd.f32 1.4214138, %v1147_v28  ;;  %v1039_v10 = vand.u32 2147483647, %v2198_v18  ;;  %v1402_v25 = vmul.f32 0.5, %v2063_v9 }
 0x1a3   :  { %1449 = vst [vmem:[#allocation5 + $0x38] sm:$0xff] %v1433_v57  ;;  %v1072_v30 = vadd.f32 1.0, %v1056_v1  ;;  %1596 = vrcp.f32 %v1070_v23  ;;  %v1304_v31 = vmul.f32 1.442695, %v1277_v12  ;;  %v1262_v32 = vsub.f32 0.0, %v1038_v29 }
 0x1a4   :  { %v2193_v7 = vpop.eup %1590  ;;  %v1338_v61 = vsub.f32 1.0, %v1322_v62  ;;  %v1179_v21 = vmul.f32 %v2168_v34, %v1163_v54  ;;  %v1055_v6 = vmul.f32 0.3275911, %v1039_v10  ;;  %v2211_v14 = vmul.f32 0.70710677, %v2201_v17 }
 0x1a5   :  { %v1116_v8 = vmul.f32 1.0614054, %v2193_v7  ;;  %1598 = vrcp.f32 %v1072_v30  ;;  %v1264_v0 = vsub.f32 0.0, %v1040_v51  ;;  %v1278_v49 = vmul.f32 %v1262_v32, %v1038_v29 }
 0x1a6   :  { %v1370_v38 = vsub.f32 0.0, %v1338_v61  ;;  %v1522_v42 = vadd.f32 -0.28449672, %v1179_v21  ;;  %1600 = vpow2.f32 %v1302_v13  ;;  %v1071_v9 = vadd.f32 1.0, %v1055_v6 }
 0x1a7   :  { %v1507_v5 = vadd.f32 -1.4531521, %v1116_v8  ;;  %v1041_v39 = vand.u32 2147483647, %v2211_v14  ;;  %v1280_v53 = vmul.f32 %v1264_v0, %v1040_v51  ;;  %v1306_v62 = vmul.f32 1.442695, %v1278_v49 }
 0x1a8   :  { %v1386_v24 = vsel %vm1354_vm1, %v1338_v61, %v1370_v38  ;;  %v1211_v43 = vmul.f32 %v2168_v34, %v1522_v42  ;;  %v2208_v11 = vpop.eup %1592  ;;  %1602 = vrcp.f32 %v1071_v9  ;;  %v1263_v54 = vsub.f32 0.0, %v1039_v10 }
 0x1a9   :  { %v1418_v27 = vadd.f32 1.0, %v1386_v24  ;;  %v1148_v3 = vmul.f32 %v2193_v7, %v1507_v5  ;;  %v1117_v47 = vmul.f32 1.0614054, %v2208_v11  ;;  %v1057_v46 = vmul.f32 0.3275911, %v1041_v39 }
 0x1aa   :  { %v1227_v20 = vadd.f32 0.2548296, %v1211_v43  ;;  %v1595_v15 = vpop.eup %1594  ;;  %1604 = vpow2.f32 %v1304_v31  ;;  %v1403_v61 = vmul.f32 0.5, %v2066_v16  ;;  %v1310_v13 = vmul.f32 1.442695, %v1280_v53 }
 0x1ab   :  { %v1434_v33 = vmul.f32 %v1418_v27, %v1402_v25  ;;  %v1164_v26 = vadd.f32 1.4214138, %v1148_v3  ;;  %v1508_v58 = vadd.f32 -1.4531521, %v1117_v47  ;;  %v1073_v55 = vadd.f32 1.0, %v1057_v46 }
 0x1ac   :  { %v1243_v37 = vmul.f32 %v2168_v34, %v1227_v20  ;;  %v1279_v36 = vmul.f32 %v1263_v54, %v1039_v10  ;;  %v1265_v3 = vsub.f32 0.0, %v1041_v39  ;;  %vm1356_vm4 = vcmp.ge.f32.partialorder %v2143_v56, 0.0 }
 0x1ad   :  { %1450 = vst [vmem:[#allocation5 + $0x40] sm:$0xff] %v1434_v33  ;;  %v1180_v41 = vmul.f32 %v2193_v7, %v1164_v26  ;;  %v1149_v28 = vmul.f32 %v2208_v11, %v1508_v58  ;;  %1606 = vrcp.f32 %v1073_v55  ;;  %v1404_v46 = vmul.f32 0.5, %v2125_v22 }
 0x1ae   :  { %v1323_v44 = vmul.f32 %v1595_v15, %v1243_v37  ;;  %1608 = vpow2.f32 %v1306_v62  ;;  %v1308_v33 = vmul.f32 1.442695, %v1279_v36  ;;  %v1281_v0 = vmul.f32 %v1265_v3, %v1041_v39 }
 0x1af   :  { %v1523_v63 = vadd.f32 -0.28449672, %v1180_v41  ;;  %v1165_v57 = vadd.f32 1.4214138, %v1149_v28  ;;  %1610 = vpow2.f32 %v1310_v13  ;;  %vm1357_vm6 = vcmp.ge.f32.partialorder %v2158_v52, 0.0 }
 0x1b0   :  { %v1339_v50 = vsub.f32 1.0, %v1323_v44  ;;  %v2219_v59 = vpop.eup %1596  ;;  %1612 = vpow2.f32 %v1308_v33  ;;  %vm1358_vm7 = vcmp.ge.f32.partialorder %v2180_v40, 0.0  ;;  %vm1360_vm8 = vcmp.ge.f32.partialorder %v2183_v45, 0.0 }
 0x1b1   :  { %v1212_v34 = vmul.f32 %v2193_v7, %v1523_v63  ;;  %v1181_v23 = vmul.f32 %v2208_v11, %v1165_v57  ;;  %v1118_v4 = vmul.f32 1.0614054, %v2219_v59  ;;  %vm1359_vm9 = vcmp.ge.f32.partialorder %v2198_v18, 0.0 }
 0x1b2   :  { %v1371_v60 = vsub.f32 0.0, %v1339_v50  ;;  %v2221_v1 = vpop.eup %1598  ;;  %vm1361_vm11 = vcmp.ge.f32.partialorder %v2211_v14, 0.0 }
 0x1b3   :  { %v1228_v29 = vadd.f32 0.2548296, %v1212_v34  ;;  %v1120_v21 = vmul.f32 1.0614054, %v2221_v1  ;;  %v1601_v30 = vpop.eup %1600  ;;  %v1524_v38 = vadd.f32 -0.28449672, %v1181_v23 }
 0x1b4   :  { %v1387_v51 = vsel %vm1355_vm2, %v1339_v50, %v1371_v60  ;;  %v1509_v42 = vadd.f32 -1.4531521, %v1118_v4  ;;  %v1312_v60 = vmul.f32 1.442695, %v1281_v0 }
 0x1b5   :  { %v1419_v8 = vadd.f32 1.0, %v1387_v51  ;;  %v1244_v12 = vmul.f32 %v2193_v7, %v1228_v29  ;;  %v1511_v5 = vadd.f32 -1.4531521, %v1120_v21  ;;  %v1213_v43 = vmul.f32 %v2208_v11, %v1524_v38  ;;  %v1603_v7 = vpop.eup %1602 }
 0x1b6   :  { %v1150_v27 = vmul.f32 %v2219_v59, %v1509_v42  ;;  %v1119_v9 = vmul.f32 1.0614054, %v1603_v7  ;;  %v1405_v51 = vmul.f32 0.5, %v2147_v48  ;;  %1614 = vpow2.f32 %v1312_v60 }
 0x1b7   :  { %v1435_v24 = vmul.f32 %v1419_v8, %v1403_v61  ;;  %v1324_v25 = vmul.f32 %v1601_v30, %v1244_v12  ;;  %v1152_v16 = vmul.f32 %v2221_v1, %v1511_v5  ;;  %v1229_v6 = vadd.f32 0.2548296, %v1213_v43  ;;  %v1605_v15 = vpop.eup %1604 }
 0x1b8   :  { %v1166_v20 = vadd.f32 1.4214138, %v1150_v27  ;;  %v1510_v49 = vadd.f32 -1.4531521, %v1119_v9 }
 0x1b9   :  { %1451 = vst [vmem:[#allocation5 + $0x48] sm:$0xff] %v1435_v24  ;;  %v1340_v31 = vsub.f32 1.0, %v1324_v25  ;;  %v1168_v32 = vadd.f32 1.4214138, %v1152_v16  ;;  %v1245_v10 = vmul.f32 %v2208_v11, %v1229_v6 }
 0x1ba   :  { %v1182_v47 = vmul.f32 %v2219_v59, %v1166_v20  ;;  %v1607_v50 = vpop.eup %1606  ;;  %v1151_v55 = vmul.f32 %v1603_v7, %v1510_v49  ;;  %v1406_v20 = vmul.f32 0.5, %v2171_v19 }
 0x1bb   :  { %v1372_v26 = vsub.f32 0.0, %v1340_v31  ;;  %v1184_v37 = vmul.f32 %v2221_v1, %v1168_v32  ;;  %v1325_v58 = vmul.f32 %v1605_v15, %v1245_v10  ;;  %v1121_v57 = vmul.f32 1.0614054, %v1607_v50  ;;  %v1609_v23 = vpop.eup %1608 }
 0x1bc   :  { %v1525_v44 = vadd.f32 -0.28449672, %v1182_v47  ;;  %v1167_v54 = vadd.f32 1.4214138, %v1151_v55  ;;  %v1611_v12 = vpop.eup %1610  ;;  %v1408_v10 = vmul.f32 0.5, %v2174_v35 }
 0x1bd   :  { %v1388_v41 = vsel %vm1356_vm4, %v1340_v31, %v1372_v26  ;;  %v1527_v28 = vadd.f32 -0.28449672, %v1184_v37  ;;  %v1341_v53 = vsub.f32 1.0, %v1325_v58  ;;  %v1512_v29 = vadd.f32 -1.4531521, %v1121_v57  ;;  %v1613_v6 = vpop.eup %1612 }
 0x1be   :  { %v1420_v63 = vadd.f32 1.0, %v1388_v41  ;;  %v1214_v11 = vmul.f32 %v2219_v59, %v1525_v44  ;;  %v1183_v21 = vmul.f32 %v1603_v7, %v1167_v54  ;;  %v1407_v44 = vmul.f32 0.5, %v2191_v2 }
 0x1bf   :  { %v1216_v56 = vmul.f32 %v2221_v1, %v1527_v28  ;;  %v1373_v39 = vsub.f32 0.0, %v1341_v53  ;;  %v1153_v8 = vmul.f32 %v1607_v50, %v1512_v29 }
 0x1c0   :  { %v1436_v34 = vmul.f32 %v1420_v63, %v1404_v46  ;;  %v1230_v62 = vadd.f32 0.2548296, %v1214_v11  ;;  %v1526_v42 = vadd.f32 -0.28449672, %v1183_v21 }
 0x1c1   :  { %v1232_v22 = vadd.f32 0.2548296, %v1216_v56  ;;  %v1389_v4 = vsel %vm1357_vm6, %v1341_v53, %v1373_v39  ;;  %v1169_v52 = vadd.f32 1.4214138, %v1153_v8 }
 0x1c2   :  { %1452 = vst [vmem:[#allocation5 + $0x50] sm:$0xff] %v1436_v34  ;;  %v1246_v61 = vmul.f32 %v2219_v59, %v1230_v62  ;;  %v1421_v13 = vadd.f32 1.0, %v1389_v4  ;;  %v1215_v25 = vmul.f32 %v1603_v7, %v1526_v42 }
 0x1c3   :  { %v1248_v30 = vmul.f32 %v2221_v1, %v1232_v22  ;;  %v1185_v27 = vmul.f32 %v1607_v50, %v1169_v52  ;;  %v1615_v58 = vpop.eup %1614 }
 0x1c4   :  { %v1326_v38 = vmul.f32 %v1609_v23, %v1246_v61  ;;  %v1437_v5 = vmul.f32 %v1421_v13, %v1405_v51  ;;  %v1231_v16 = vadd.f32 0.2548296, %v1215_v25 }
 0x1c5   :  { %v1328_v36 = vmul.f32 %v1611_v12, %v1248_v30  ;;  %v1528_v3 = vadd.f32 -0.28449672, %v1185_v27 }
 0x1c6   :  { %v1342_v24 = vsub.f32 1.0, %v1326_v38  ;;  %1453 = vst [vmem:[#allocation5 + $0x58] sm:$0xff] %v1437_v5  ;;  %v1247_v31 = vmul.f32 %v1603_v7, %v1231_v16 }
 0x1c7   :  { %v1344_v43 = vsub.f32 1.0, %v1328_v36  ;;  %v1217_v26 = vmul.f32 %v1607_v50, %v1528_v3 }
 0x1c8   :  { %v1374_v48 = vsub.f32 0.0, %v1342_v24  ;;  %v1327_v9 = vmul.f32 %v1613_v6, %v1247_v31 }
 0x1c9   :  { %v1376_v59 = vsub.f32 0.0, %v1344_v43  ;;  %v1233_v37 = vadd.f32 0.2548296, %v1217_v26 }
 0x1ca   :  { %v1390_v1 = vsel %vm1358_vm7, %v1342_v24, %v1374_v48  ;;  %v1343_v40 = vsub.f32 1.0, %v1327_v9 }
 0x1cb   :  { %v1422_v32 = vadd.f32 1.0, %v1390_v1  ;;  %v1392_v33 = vsel %vm1360_vm8, %v1344_v43, %v1376_v59  ;;  %v1249_v41 = vmul.f32 %v1607_v50, %v1233_v37  ;;  %v1409_v50 = vmul.f32 0.5, %v2201_v17 }
 0x1cc   :  { %v1424_v47 = vadd.f32 1.0, %v1392_v33  ;;  %v1375_v45 = vsub.f32 0.0, %v1343_v40 }
 0x1cd   :  { %v1438_v15 = vmul.f32 %v1422_v32, %v1406_v20  ;;  %v1329_v7 = vmul.f32 %v1615_v58, %v1249_v41 }
 0x1ce   :  { %v1440_v0 = vmul.f32 %v1424_v47, %v1408_v10  ;;  %v1391_v19 = vsel %vm1359_vm9, %v1343_v40, %v1375_v45 }
 0x1cf   :  { %1454 = vst [vmem:[#allocation5 + $0x60] sm:$0xff] %v1438_v15  ;;  %v1423_v49 = vadd.f32 1.0, %v1391_v19  ;;  %v1345_v46 = vsub.f32 1.0, %v1329_v7 }
 0x1d0   :  { %1456 = vst [vmem:[#allocation5 + $0x70] sm:$0xff] %v1440_v0 }
 0x1d1   :  { %v1439_v35 = vmul.f32 %v1423_v49, %v1407_v44  ;;  %v1377_v63 = vsub.f32 0.0, %v1345_v46 }
 0x1d3   :  { %1455 = vst [vmem:[#allocation5 + $0x68] sm:$0xff] %v1439_v35  ;;  %v1393_v28 = vsel %vm1361_vm11, %v1345_v46, %v1377_v63 }
 0x1d4   :  { %v1425_v53 = vadd.f32 1.0, %v1393_v28 }
 0x1d6   :  { %v1441_v11 = vmul.f32 %v1425_v53, %v1409_v50 }
 0x1d8   :  { %1457 = vst [vmem:[#allocation5 + $0x78] sm:$0xff] %v1441_v11 }
 0x1d9   :  { %1647 = shalt.err (!%p1644_p9)
}
 0x1da   :  { %1467 = dma.vmem_to_hbm [thread:$0]  %s1465_s21, 2048, %s2257_s3, [#allocation4]  }
 0x1db   :  { %1658 = dma.done.wait [#allocation4], 2048  }
 0x1dc   :  { %1659 = vsyncadd [#allocation4], 4294965248 }
 0x1dd   :  { %1471 = vsyncpa [#allocation3], 1 }
 0x1de   :  { %1472 = vsyncpa [#allocation4], 1 }

</bundles_post_ra>
